<compile_context>
chip_gen: v7x
topology: tpu7x:2x2x1
jax: 0.10.0
libtpu: 0.0.40
codegen_flags: <defaults>
</compile_context>

<pallas_src>
import functools

import jax
import jax.numpy as jnp
import numpy as np
from jax.experimental import pallas as pl
from jax.experimental.pallas import tpu as pltpu


# ---------------------------------------------------------------------------
# Size arithmetic copied verbatim (numpy) from the PyTorch conv_3d.__init__.
# ---------------------------------------------------------------------------
def conv3d_layer_sizes(shape_conv, size):
    """shape_conv: 4-D per-time-step shape [B, D, H, W] handed to conv_3d.
    Returns (kernel, pool) 3-tuples exactly like the torch module computes."""
    shape = list(shape_conv)
    if len(shape) == 3:
        shape.insert(1, 1)
    if len(shape) == 4:
        shape.insert(1, 1)                      # -> [B, 1, D, H, W]
    x_shape1 = np.array(shape[-3:-1])           # (D, H)
    x_shape = x_shape1 // size
    x_shape[x_shape <= 2] = 3
    x_shape = np.minimum(x_shape, x_shape1)
    kernels = x_shape.tolist()
    if len(kernels) != 3:
        kernels = kernels + [1]
    x_shape = x_shape // 2
    x_shape[x_shape == 0] = 1
    pool_size = x_shape.tolist()
    if len(pool_size) != 3:
        pool_size = pool_size + [1]
    return tuple(int(k) for k in kernels), tuple(int(p) for p in pool_size)


# ---------------------------------------------------------------------------
# Pallas kernel: per time step -> conv-as-GEMM + bias + ELU + avg pool.
# ---------------------------------------------------------------------------
def _make_kernel(D1, H1, BW, C, D2, H2, P1, P2):
    inv_pool = 1.0 / float(P1 * P2)

    def kernel(p_ref, w_ref, b_ref, o_ref):
        # p_ref: [1, Npos, K]   rows ordered n = ((d1*H1 + h1)*B + b)*W1 + w1
        # w_ref: [1, K, C]      this time step's conv weights (k = i*K2 + j)
        # b_ref: [1, 1, C]      this time step's bias
        # o_ref: [1, D2, H2, BW, C]
        y = jnp.dot(p_ref[0], w_ref[0],
                    preferred_element_type=jnp.float32)      # MXU GEMM
        y = y + b_ref[0]                                      # [Npos, C]
        # ELU (alpha = 1.0)
        y = jnp.where(y > 0.0, y, jnp.exp(y) - 1.0)
        # Tile-preserving reshape (inner sublane factor BW): [Npos,C]->[D1,H1,BW,C]
        y = y.reshape(D1, H1, BW, C)
        # AvgPool3d((P1, P2, 1), stride=1): leading-dim slices, unrolled
        acc = None
        for pi in range(P1):
            for pj in range(P2):
                s = y[pi:pi + D2, pj:pj + H2]
                acc = s if acc is None else acc + s
        o_ref[0] = (acc * inv_pool).astype(o_ref.dtype)

    return kernel


@functools.partial(jax.jit, static_argnames=("pool_hw",))
def time_distr_conv3d_forward(x, weights, bias, pool_hw):
    """x: [B, T, D, H, W] f32.
    weights: [T, K1, K2, C]  (per-time-step Conv3d kernel (K1, K2, 1), stride 2,
                              'valid', in_channels=1)
    bias:    [T, C]
    pool_hw: (P1, P2)        (AvgPool3d((P1, P2, 1), stride=1))
    Returns [B, T, C, D2, H2, W2] — same as the PyTorch module forward."""
    B, T, D, H, W = x.shape
    _, K1, K2, C = weights.shape
    P1, P2 = pool_hw
    D1 = (D - K1) // 2 + 1
    H1 = (H - K2) // 2 + 1
    W1 = (W - 1) // 2 + 1
    D2 = D1 - P1 + 1
    H2 = H1 - P2 + 1
    K = K1 * K2
    BW = B * W1
    NPOS = D1 * H1 * BW

    # ---- im2col (wrapper-side layout plumbing; cheap XLA strided slices) ----
    cols = []
    for i in range(K1):
        for j in range(K2):
            cols.append(x[:, :,
                          i:i + 2 * (D1 - 1) + 1:2,
                          j:j + 2 * (H1 - 1) + 1:2,
                          0:2 * (W1 - 1) + 1:2])      # [B, T, D1, H1, W1]
    patches = jnp.stack(cols, axis=-1)                # [B, T, D1, H1, W1, K]
    patches = jnp.transpose(patches, (1, 2, 3, 0, 4, 5))  # [T, D1, H1, B, W1, K]
    patches = patches.reshape(T, NPOS, K)

    w2 = weights.reshape(T, K, C)                     # k = i*K2 + j
    b2 = bias.reshape(T, 1, C)

    kernel = _make_kernel(D1, H1, BW, C, D2, H2, P1, P2)

    out_k = pl.pallas_call(
        kernel,
        out_shape=jax.ShapeDtypeStruct((T, D2, H2, BW, C), x.dtype),
        grid=(T,),
        in_specs=[
            pl.BlockSpec((1, NPOS, K), lambda t: (t, 0, 0)),
            pl.BlockSpec((1, K, C), lambda t: (t, 0, 0)),
            pl.BlockSpec((1, 1, C), lambda t: (t, 0, 0)),
        ],
        out_specs=pl.BlockSpec((1, D2, H2, BW, C),
                               lambda t: (t, 0, 0, 0, 0)),
        compiler_params=pltpu.CompilerParams(
            dimension_semantics=("parallel",)),
    )(patches, w2, b2)

    out = out_k.reshape(T, D2, H2, B, W1, C)
    return jnp.transpose(out, (3, 0, 5, 1, 2, 4))     # [B, T, C, D2, H2, W2]


# ---------------------------------------------------------------------------
# Pure-JAX reference (independent: lax conv + reduce_window).
# ---------------------------------------------------------------------------
def reference_forward(x, weights, bias, pool_hw):
    B, T, D, H, W = x.shape
    _, K1, K2, C = weights.shape
    P1, P2 = pool_hw
    outs = []
    for t in range(T):
        xt = x[:, t][:, None]                                          # [B,1,D,H,W]
        wt = jnp.transpose(weights[t], (2, 0, 1))[:, None, :, :, None]  # [C,1,K1,K2,1]
        yt = jax.lax.conv_general_dilated(
            xt, wt, window_strides=(2, 2, 2), padding="VALID",
            dimension_numbers=("NCDHW", "OIDHW", "NCDHW"),
            precision=jax.lax.Precision.HIGHEST)
        yt = yt + bias[t][None, :, None, None, None]
        yt = jnp.where(yt > 0.0, yt, jnp.exp(yt) - 1.0)                # ELU
        pt = jax.lax.reduce_window(
            yt, 0.0, jax.lax.add,
            (1, 1, P1, P2, 1), (1, 1, 1, 1, 1), "VALID") / float(P1 * P2)
        outs.append(pt[:, None])                                       # [B,1,C,D2,H2,W2]
    return jnp.concatenate(outs, axis=1)


if __name__ == "__main__":
    # Module config (mirrors time_distr_conv_3d(shape, params, size, ...)).
    B, T, D, H, W = 2, 3, 16, 16, 8
    size = 4
    params = {"act_func": "elu", "filters": 8}
    layer_id = 0

    kernels, pool = conv3d_layer_sizes([B, D, H, W], size)   # (4,4,1), (2,2,1)
    K1, K2, _ = kernels
    P1, P2, _ = pool
    # TODO(synk): the reference __init__ gives conv i `(i+1)*filters` output
    # channels, which makes its own torch.cat along dim=1 impossible for T>1;
    # we keep separate weights per time step but a shared channel count
    # (derived from the wrapper's layer_id) so the stacked output is defined.
    C = (int(layer_id) + 1) * params["filters"]

    key = jax.random.PRNGKey(0)
    kx, kw, kb = jax.random.split(key, 3)
    x = jax.random.normal(kx, (B, T, D, H, W), dtype=jnp.float32)
    weights = jax.random.normal(kw, (T, K1, K2, C), dtype=jnp.float32) / np.sqrt(K1 * K2)
    bias = 0.1 * jax.random.normal(kb, (T, C), dtype=jnp.float32)

    out = time_distr_conv3d_forward(x, weights, bias, (P1, P2))
    out = jax.block_until_ready(out)

    ref = reference_forward(x, weights, bias, (P1, P2))
    assert out.shape == ref.shape, (out.shape, ref.shape)
    assert out.dtype == jnp.float32
    # MXU f32 matmul may round through bf16 passes; loose but bug-catching tol.
    max_err = float(jnp.max(jnp.abs(out - ref)))
    assert max_err < 5e-2, max_err

    print("KERNEL_OK")
</pallas_src>

<mosaic_0001>
module attributes {stable_mosaic.version = 11 : i64} {
  func.func @kernel(%arg0: i32, %arg1: memref<1x392x16xf32, #tpu.memory_space<vmem>>, %arg2: memref<1x16x8xf32, #tpu.memory_space<vmem>>, %arg3: memref<1x1x8xf32, #tpu.memory_space<vmem>>, %arg4: memref<1x6x6x8x8xf32, #tpu.memory_space<vmem>>) attributes {dimension_semantics = [#tpu.dimension_semantics<parallel>], iteration_bounds = array<i64: 3>, scalar_prefetch = 0 : i64, scratch_operands = 0 : i64, tpu.core_type = #tpu.core_type<tc>, window_params = [{transform_indices = @transform_0, window_bounds = array<i64: 1, 392, 16>}, {transform_indices = @transform_1, window_bounds = array<i64: 1, 16, 8>}, {transform_indices = @transform_2, window_bounds = array<i64: 1, 1, 8>}, {transform_indices = @transform_3, window_bounds = array<i64: 1, 6, 6, 8, 8>}]} {
    %c0 = arith.constant 0 : index
    %c0_0 = arith.constant 0 : index
    %c0_1 = arith.constant 0 : index
    %0 = vector.load %arg1[%c0, %c0_0, %c0_1] : memref<1x392x16xf32, #tpu.memory_space<vmem>>, vector<1x392x16xf32>
    %1 = vector.shape_cast %0 : vector<1x392x16xf32> to vector<392x16xf32>
    %c0_2 = arith.constant 0 : index
    %c0_3 = arith.constant 0 : index
    %c0_4 = arith.constant 0 : index
    %2 = vector.load %arg2[%c0_2, %c0_3, %c0_4] : memref<1x16x8xf32, #tpu.memory_space<vmem>>, vector<1x16x8xf32>
    %3 = vector.shape_cast %2 : vector<1x16x8xf32> to vector<16x8xf32>
    %cst = arith.constant dense<0.000000e+00> : vector<392x8xf32>
    %4 = tpu.matmul %1, %3, %cst {dimension_numbers = #tpu.dot_dimension_numbers<[1], [0], [0], [1], [0, 0, 1, 1], [], []>} : vector<392x16xf32>, vector<16x8xf32>, vector<392x8xf32> -> vector<392x8xf32>
    %c0_5 = arith.constant 0 : index
    %c0_6 = arith.constant 0 : index
    %c0_7 = arith.constant 0 : index
    %5 = vector.load %arg3[%c0_5, %c0_6, %c0_7] : memref<1x1x8xf32, #tpu.memory_space<vmem>>, vector<1x1x8xf32>
    %6 = vector.shape_cast %5 : vector<1x1x8xf32> to vector<1x8xf32>
    %7 = vector.broadcast %6 : vector<1x8xf32> to vector<392x8xf32>
    %8 = arith.addf %4, %7 : vector<392x8xf32>
    %cst_8 = arith.constant 0.000000e+00 : f32
    %9 = vector.broadcast %cst_8 : f32 to vector<392x8xf32>
    %10 = arith.cmpf ogt, %8, %9 : vector<392x8xf32>
    %11 = math.exp %8 : vector<392x8xf32>
    %cst_9 = arith.constant 1.000000e+00 : f32
    %12 = vector.broadcast %cst_9 : f32 to vector<392x8xf32>
    %13 = arith.subf %11, %12 : vector<392x8xf32>
    %14 = arith.select %10, %8, %13 : vector<392x8xi1>, vector<392x8xf32>
    %15 = vector.shape_cast %14 : vector<392x8xf32> to vector<7x7x8x8xf32>
    %16 = vector.extract_strided_slice %15 {offsets = [0, 0, 0, 0], sizes = [6, 6, 8, 8], strides = [1, 1, 1, 1]} : vector<7x7x8x8xf32> to vector<6x6x8x8xf32>
    %17 = vector.extract_strided_slice %15 {offsets = [0, 1, 0, 0], sizes = [6, 6, 8, 8], strides = [1, 1, 1, 1]} : vector<7x7x8x8xf32> to vector<6x6x8x8xf32>
    %18 = arith.addf %16, %17 : vector<6x6x8x8xf32>
    %19 = vector.extract_strided_slice %15 {offsets = [1, 0, 0, 0], sizes = [6, 6, 8, 8], strides = [1, 1, 1, 1]} : vector<7x7x8x8xf32> to vector<6x6x8x8xf32>
    %20 = arith.addf %18, %19 : vector<6x6x8x8xf32>
    %21 = vector.extract_strided_slice %15 {offsets = [1, 1, 0, 0], sizes = [6, 6, 8, 8], strides = [1, 1, 1, 1]} : vector<7x7x8x8xf32> to vector<6x6x8x8xf32>
    %22 = arith.addf %20, %21 : vector<6x6x8x8xf32>
    %cst_10 = arith.constant 2.500000e-01 : f32
    %23 = vector.broadcast %cst_10 : f32 to vector<6x6x8x8xf32>
    %24 = arith.mulf %22, %23 : vector<6x6x8x8xf32>
    %c0_11 = arith.constant 0 : index
    %c0_12 = arith.constant 0 : index
    %c0_13 = arith.constant 0 : index
    %c0_14 = arith.constant 0 : index
    %c0_15 = arith.constant 0 : index
    %25 = vector.load %arg4[%c0_11, %c0_12, %c0_13, %c0_14, %c0_15] : memref<1x6x6x8x8xf32, #tpu.memory_space<vmem>>, vector<1x6x6x8x8xf32>
    %26 = vector.shape_cast %25 : vector<1x6x6x8x8xf32> to vector<6x6x8x8xf32>
    %27 = vector.shape_cast %24 : vector<6x6x8x8xf32> to vector<1x6x6x8x8xf32>
    tpu.vector_store %arg4[%c0_11, %c0_12, %c0_13, %c0_14, %c0_15], %27 {strides = array<i32>} : memref<1x6x6x8x8xf32, #tpu.memory_space<vmem>>, vector<1x6x6x8x8xf32>,
    return
  }
  func.func @transform_0(%arg0: i32) -> (i32, i32, i32) {
    %c0_i32 = arith.constant 0 : i32
    %c0_i32_0 = arith.constant 0 : i32
    %c0_i32_1 = arith.constant 0 : i32
    return %arg0, %c0_i32, %c0_i32_0 : i32, i32, i32
  }
  func.func @transform_1(%arg0: i32) -> (i32, i32, i32) {
    %c0_i32 = arith.constant 0 : i32
    %c0_i32_0 = arith.constant 0 : i32
    %c0_i32_1 = arith.constant 0 : i32
    return %arg0, %c0_i32, %c0_i32_0 : i32, i32, i32
  }
  func.func @transform_2(%arg0: i32) -> (i32, i32, i32) {
    %c0_i32 = arith.constant 0 : i32
    %c0_i32_0 = arith.constant 0 : i32
    %c0_i32_1 = arith.constant 0 : i32
    return %arg0, %c0_i32, %c0_i32_0 : i32, i32, i32
  }
  func.func @transform_3(%arg0: i32) -> (i32, i32, i32, i32, i32) {
    %c0_i32 = arith.constant 0 : i32
    %c0_i32_0 = arith.constant 0 : i32
    %c0_i32_1 = arith.constant 0 : i32
    %c0_i32_2 = arith.constant 0 : i32
    %c0_i32_3 = arith.constant 0 : i32
    return %arg0, %c0_i32, %c0_i32_0, %c0_i32_1, %c0_i32_2 : i32, i32, i32, i32, i32
  }
}

</mosaic_0001>

<bundles_post_ra>
// kernel: time_distr_conv3d_forward.1
= control target key start
LH: loop header
LB: loop body
LE: loop exit
PB: predicated region body
PF: predicated region fallthrough
CT: control target
= control target key end

     0   :  { %s1684_s12 = smov 0   ;;  %s2490_s0 = inlined_call_operand.vmem [shape: f32[3,392,16], index: 0, kind: input, shape index: {}]   ;;  %s2491_s1 = inlined_call_operand.vmem [shape: f32[3,16,8], index: 1, kind: input, shape index: {}]   ;;  %s2492_s2 = inlined_call_operand.vmem [shape: f32[3,1,8], index: 2, kind: input, shape index: {}]   ;;  %s2493_s3 = inlined_call_operand.vmem [shape: f32[3,6,6,8,8], index: 3, kind: output, shape index: {}]  }
   0x1 LB: > { %s1223_s13 = sadd.s32 4294967295, %s1659_s12   ;;  %p1227_p0 = scmp.ge.s32.totalorder %s1659_s12, 1  ;;  %s1659_s12 = sphi %s1684_s12, %s13_s12  }
   0x2   : > { %p155_p1 = scmp.lt.s32.totalorder %s1659_s12, 4 }
   0x4   : > { %p156_p2 = pnand %p1227_p0, %p155_p1 }
   0x5   : > { %p187_p3 = scmp.lt.s32.totalorder (!%p156_p2), %s1223_s13, 2  ;;  %v1661_v0 = vmov (!%p156_p2), 0.0|0.0   ;;  %vm1662_vm0 = vmmov (!%p156_p2), 0   ;;  %v1663_v1 = vmov (!%p156_p2), 0.0   ;;  %vm263_vm1 = vcmask (!%p156_p2), 130048  }
   0x6   : > { %159 = sbr.rel (%p156_p2) target bundleno = 365 (0x16d), region = 32  ;;  %1536 = vmatprep.subr.bf16.mxu0 (!%p156_p2), %v1661_v0  ;;  %1539 = vmatprep.subr.bf16.mxu1 (!%p156_p2), %v1661_v0 }
   0x7   : > { %1389 = vmatprep.mubr.msk.f32.mxu0 (!%p156_p2), %vm1662_vm0, %v1663_v1  ;;  %1464 = vmatprep.mubr.msk.f32.mxu1 (!%p156_p2), %vm1662_vm0, %v1663_v1 }
   0xd   : > { %s2495_s13 = smov (!%p187_p3, %s1223_s13), 2 }
   0xe   : > { %s1333_s14 = sshll.u32 %s2495_s13, 4  ;;  %s1541_s15 = smul.u32 392, %s2495_s13 }
   0xf   : > { %s196_s18 = scalar_lea.vmem %s2491_s1, %s1333_s14  ;;  %s1904_s24 = scalar_lea.vmem %s2492_s2, %s2495_s13 }
  0x10   : > { %v254_v2 = vld [vmem:[%s196_s18] sm:$0xff]  ;;  %v255_v3 = vld [vmem:[%s196_s18 + $0x8] sm:$0xff]  ;;  %s1706_s21 = scalar_lea.vmem %s2490_s0, %s1541_s15  ;;  %s1542_s25 = smul.u32 288, %s2495_s13 }
  0x11   : > { %v1537_v4 = vpack.c.bf16 %v255_v3, %v254_v2  ;;  %v205_v5 = vld [vmem:[%s1706_s21] sm:$0xff]  ;;  %v230_v6 = vld [vmem:[%s1706_s21 + $0xc8] sm:$0xff]  ;;  %v231_v8 = vld [vmem:[%s1706_s21 + $0xd0] sm:$0xff] }
  0x12   : > { %v206_v7 = vld [vmem:[%s1706_s21 + $0x8] sm:$0xff]  ;;  %v207_v9 = vld [vmem:[%s1706_s21 + $0x10] sm:$0xff]  ;;  %v232_v10 = vld [vmem:[%s1706_s21 + $0xd8] sm:$0xff]  ;;  %s2102_s28 = scalar_lea.vmem %s2493_s3, %s1542_s25 }
  0x13   : > { %1538 = vmatpush3.bf16.msra.mxu0 %v1537_v4  ;;  %1540 = vmatpush3.bf16.msra.mxu1 %v1537_v4  ;;  %v208_v11 = vld [vmem:[%s1706_s21 + $0x18] sm:$0xff]  ;;  %v233_v12 = vld [vmem:[%s1706_s21 + $0xe0] sm:$0xff]  ;;  %v234_v14 = vld [vmem:[%s1706_s21 + $0xe8] sm:$0xff] }
  0x14   : > { %v209_v13 = vld [vmem:[%s1706_s21 + $0x20] sm:$0xff]  ;;  %v210_v15 = vld [vmem:[%s1706_s21 + $0x28] sm:$0xff]  ;;  %v235_v16 = vld [vmem:[%s1706_s21 + $0xf0] sm:$0xff] }
  0x15   : > { %v211_v17 = vld [vmem:[%s1706_s21 + $0x30] sm:$0xff]  ;;  %v236_v18 = vld [vmem:[%s1706_s21 + $0xf8] sm:$0xff]  ;;  %v237_v20 = vld [vmem:[%s1706_s21 + $0x100] sm:$0xff] }
  0x16   : > { %1390 = vmatmul.mubr.msk.f32.vlgmr.msra.gmra.mrb[0].mxu0 %vm263_vm1, %v205_v5  ;;  %1465 = vmatmul.mubr.msk.f32.vlgmr.msra.gmra.mrb[0].mxu1 %vm263_vm1, %v230_v6  ;;  %v212_v19 = vld [vmem:[%s1706_s21 + $0x38] sm:$0xff]  ;;  %v213_v21 = vld [vmem:[%s1706_s21 + $0x40] sm:$0xff]  ;;  %v238_v22 = vld [vmem:[%s1706_s21 + $0x108] sm:$0xff] }
  0x17   : > { %1392 = vmatprep.mubr.msk.f32.mxu0 %vm1662_vm0, %v1663_v1  ;;  %1467 = vmatprep.mubr.msk.f32.mxu1 %vm1662_vm0, %v1663_v1  ;;  %v214_v23 = vld [vmem:[%s1706_s21 + $0x48] sm:$0xff]  ;;  %v239_v24 = vld [vmem:[%s1706_s21 + $0x110] sm:$0xff]  ;;  %v240_v26 = vld [vmem:[%s1706_s21 + $0x118] sm:$0xff] }
  0x18   : > { %v215_v25 = vld [vmem:[%s1706_s21 + $0x50] sm:$0xff]  ;;  %v216_v27 = vld [vmem:[%s1706_s21 + $0x58] sm:$0xff]  ;;  %v241_v28 = vld [vmem:[%s1706_s21 + $0x120] sm:$0xff] }
  0x19   : > { %v217_v29 = vld [vmem:[%s1706_s21 + $0x60] sm:$0xff]  ;;  %v242_v30 = vld [vmem:[%s1706_s21 + $0x128] sm:$0xff]  ;;  %v243_v32 = vld [vmem:[%s1706_s21 + $0x130] sm:$0xff] }
  0x1a   : > { %1393 = vmatmul.mubr.msk.f32.gmra.mrb[2].mxu0 %vm263_vm1, %v206_v7  ;;  %1468 = vmatmul.mubr.msk.f32.gmra.mrb[2].mxu1 %vm263_vm1, %v231_v8  ;;  %v218_v31 = vld [vmem:[%s1706_s21 + $0x68] sm:$0xff]  ;;  %v219_v33 = vld [vmem:[%s1706_s21 + $0x70] sm:$0xff]  ;;  %v244_v34 = vld [vmem:[%s1706_s21 + $0x138] sm:$0xff] }
  0x1b   : > { %1395 = vmatprep.mubr.msk.f32.mxu0 %vm1662_vm0, %v1663_v1  ;;  %1470 = vmatprep.mubr.msk.f32.mxu1 %vm1662_vm0, %v1663_v1  ;;  %v220_v35 = vld [vmem:[%s1706_s21 + $0x78] sm:$0xff]  ;;  %v245_v36 = vld [vmem:[%s1706_s21 + $0x140] sm:$0xff]  ;;  %v246_v38 = vld [vmem:[%s1706_s21 + $0x148] sm:$0xff] }
  0x1c   : > { %v221_v37 = vld [vmem:[%s1706_s21 + $0x80] sm:$0xff]  ;;  %v222_v39 = vld [vmem:[%s1706_s21 + $0x88] sm:$0xff]  ;;  %v247_v40 = vld [vmem:[%s1706_s21 + $0x150] sm:$0xff] }
  0x1d   : > { %v223_v41 = vld [vmem:[%s1706_s21 + $0x90] sm:$0xff]  ;;  %v248_v42 = vld [vmem:[%s1706_s21 + $0x158] sm:$0xff]  ;;  %v249_v44 = vld [vmem:[%s1706_s21 + $0x160] sm:$0xff] }
  0x1e   : > { %1396 = vmatmul.mubr.msk.f32.gmra.mrb[4].mxu0 %vm263_vm1, %v207_v9  ;;  %1471 = vmatmul.mubr.msk.f32.gmra.mrb[4].mxu1 %vm263_vm1, %v232_v10  ;;  %v224_v43 = vld [vmem:[%s1706_s21 + $0x98] sm:$0xff]  ;;  %v225_v45 = vld [vmem:[%s1706_s21 + $0xa0] sm:$0xff]  ;;  %v250_v46 = vld [vmem:[%s1706_s21 + $0x168] sm:$0xff] }
  0x1f   : > { %1398 = vmatprep.mubr.msk.f32.mxu0 %vm1662_vm0, %v1663_v1  ;;  %1473 = vmatprep.mubr.msk.f32.mxu1 %vm1662_vm0, %v1663_v1  ;;  %v226_v47 = vld [vmem:[%s1706_s21 + $0xa8] sm:$0xff]  ;;  %v251_v48 = vld [vmem:[%s1706_s21 + $0x170] sm:$0xff]  ;;  %v252_v50 = vld [vmem:[%s1706_s21 + $0x178] sm:$0xff] }
  0x20   : > { %v227_v49 = vld [vmem:[%s1706_s21 + $0xb0] sm:$0xff]  ;;  %v228_v51 = vld [vmem:[%s1706_s21 + $0xb8] sm:$0xff]  ;;  %v253_v52 = vld [vmem:[%s1706_s21 + $0x180] sm:$0xff] }
  0x21   : > { %v229_v53 = vld [vmem:[%s1706_s21 + $0xc0] sm:$0xff] }
  0x22   : > { %1399 = vmatmul.mubr.msk.f32.gmra.mrb[6].mxu0 %vm263_vm1, %v208_v11  ;;  %1474 = vmatmul.mubr.msk.f32.gmra.mrb[6].mxu1 %vm263_vm1, %v233_v12  ;;  %v1907_v54 = vld [vmem:[%s1904_s24] ss:$0 sm:$0xff] }
  0x23   : > { %1401 = vmatprep.mubr.msk.f32.mxu0 %vm1662_vm0, %v1663_v1  ;;  %1476 = vmatprep.mubr.msk.f32.mxu1 %vm1662_vm0, %v1663_v1 }
  0x26   : > { %1402 = vmatmul.mubr.msk.f32.gmra.mrb[8].mxu0 %vm263_vm1, %v209_v13  ;;  %1477 = vmatmul.mubr.msk.f32.gmra.mrb[8].mxu1 %vm263_vm1, %v234_v14 }
  0x27   : > { %1404 = vmatprep.mubr.msk.f32.mxu0 %vm1662_vm0, %v1663_v1  ;;  %1479 = vmatprep.mubr.msk.f32.mxu1 %vm1662_vm0, %v1663_v1 }
  0x2a   : > { %1405 = vmatmul.mubr.msk.f32.gmra.mrb[10].mxu0 %vm263_vm1, %v210_v15  ;;  %1480 = vmatmul.mubr.msk.f32.gmra.mrb[10].mxu1 %vm263_vm1, %v235_v16 }
  0x2b   : > { %1407 = vmatprep.mubr.msk.f32.mxu0 %vm1662_vm0, %v1663_v1  ;;  %1482 = vmatprep.mubr.msk.f32.mxu1 %vm1662_vm0, %v1663_v1 }
  0x2e   : > { %1408 = vmatmul.mubr.msk.f32.gmra.mrb[12].mxu0 %vm263_vm1, %v211_v17  ;;  %1483 = vmatmul.mubr.msk.f32.gmra.mrb[12].mxu1 %vm263_vm1, %v236_v18 }
  0x2f   : > { %1410 = vmatprep.mubr.msk.f32.mxu0 %vm1662_vm0, %v1663_v1  ;;  %1485 = vmatprep.mubr.msk.f32.mxu1 %vm1662_vm0, %v1663_v1 }
  0x32   : > { %1411 = vmatmul.mubr.msk.f32.gmra.mrb[14].mxu0 %vm263_vm1, %v212_v19  ;;  %1486 = vmatmul.mubr.msk.f32.gmra.mrb[14].mxu1 %vm263_vm1, %v237_v20 }
  0x33   : > { %1413 = vmatprep.mubr.msk.f32.mxu0 %vm1662_vm0, %v1663_v1  ;;  %1488 = vmatprep.mubr.msk.f32.mxu1 %vm1662_vm0, %v1663_v1 }
  0x36   : > { %1414 = vmatmul.mubr.msk.f32.gmra.mrb[16].mxu0 %vm263_vm1, %v213_v21  ;;  %1489 = vmatmul.mubr.msk.f32.gmra.mrb[16].mxu1 %vm263_vm1, %v238_v22 }
  0x37   : > { %1416 = vmatprep.mubr.msk.f32.mxu0 %vm1662_vm0, %v1663_v1  ;;  %1491 = vmatprep.mubr.msk.f32.mxu1 %vm1662_vm0, %v1663_v1 }
  0x3a   : > { %1417 = vmatmul.mubr.msk.f32.gmra.mrb[18].mxu0 %vm263_vm1, %v214_v23  ;;  %1492 = vmatmul.mubr.msk.f32.gmra.mrb[18].mxu1 %vm263_vm1, %v239_v24 }
  0x3b   : > { %1419 = vmatprep.mubr.msk.f32.mxu0 %vm1662_vm0, %v1663_v1  ;;  %1494 = vmatprep.mubr.msk.f32.mxu1 %vm1662_vm0, %v1663_v1 }
  0x3e   : > { %1420 = vmatmul.mubr.msk.f32.gmra.mrb[20].mxu0 %vm263_vm1, %v215_v25  ;;  %1495 = vmatmul.mubr.msk.f32.gmra.mrb[20].mxu1 %vm263_vm1, %v240_v26 }
  0x3f   : > { %1422 = vmatprep.mubr.msk.f32.mxu0 %vm1662_vm0, %v1663_v1  ;;  %1497 = vmatprep.mubr.msk.f32.mxu1 %vm1662_vm0, %v1663_v1 }
  0x42   : > { %1423 = vmatmul.mubr.msk.f32.gmra.mrb[22].mxu0 %vm263_vm1, %v216_v27  ;;  %1498 = vmatmul.mubr.msk.f32.gmra.mrb[22].mxu1 %vm263_vm1, %v241_v28 }
  0x43   : > { %1425 = vmatprep.mubr.msk.f32.mxu0 %vm1662_vm0, %v1663_v1  ;;  %1500 = vmatprep.mubr.msk.f32.mxu1 %vm1662_vm0, %v1663_v1 }
  0x46   : > { %1426 = vmatmul.mubr.msk.f32.gmra.mrb[24].mxu0 %vm263_vm1, %v217_v29  ;;  %1501 = vmatmul.mubr.msk.f32.gmra.mrb[24].mxu1 %vm263_vm1, %v242_v30 }
  0x47   : > { %1428 = vmatprep.mubr.msk.f32.mxu0 %vm1662_vm0, %v1663_v1  ;;  %1503 = vmatprep.mubr.msk.f32.mxu1 %vm1662_vm0, %v1663_v1 }
  0x4a   : > { %1429 = vmatmul.mubr.msk.f32.gmra.mrb[26].mxu0 %vm263_vm1, %v218_v31  ;;  %1504 = vmatmul.mubr.msk.f32.gmra.mrb[26].mxu1 %vm263_vm1, %v243_v32 }
  0x4b   : > { %1431 = vmatprep.mubr.msk.f32.mxu0 %vm1662_vm0, %v1663_v1  ;;  %1506 = vmatprep.mubr.msk.f32.mxu1 %vm1662_vm0, %v1663_v1 }
  0x4e   : > { %1432 = vmatmul.mubr.msk.f32.gmra.mrb[28].mxu0 %vm263_vm1, %v219_v33  ;;  %1507 = vmatmul.mubr.msk.f32.gmra.mrb[28].mxu1 %vm263_vm1, %v244_v34 }
  0x4f   : > { %1434 = vmatprep.mubr.msk.f32.mxu0 %vm1662_vm0, %v1663_v1  ;;  %1509 = vmatprep.mubr.msk.f32.mxu1 %vm1662_vm0, %v1663_v1 }
  0x52   : > { %1435 = vmatmul.mubr.msk.f32.gmra.mrb[30].mxu0 %vm263_vm1, %v220_v35  ;;  %1510 = vmatmul.mubr.msk.f32.gmra.mrb[30].mxu1 %vm263_vm1, %v245_v36 }
  0x53   : > { %1437 = vmatprep.mubr.msk.f32.mxu0 %vm1662_vm0, %v1663_v1  ;;  %1512 = vmatprep.mubr.msk.f32.mxu1 %vm1662_vm0, %v1663_v1 }
  0x56   : > { %1438 = vmatmul.mubr.msk.f32.gmra.mrb[32].mxu0 %vm263_vm1, %v221_v37  ;;  %1513 = vmatmul.mubr.msk.f32.gmra.mrb[32].mxu1 %vm263_vm1, %v246_v38 }
  0x57   : > { %1440 = vmatprep.mubr.msk.f32.mxu0 %vm1662_vm0, %v1663_v1  ;;  %1515 = vmatprep.mubr.msk.f32.mxu1 %vm1662_vm0, %v1663_v1 }
  0x5a   : > { %1441 = vmatmul.mubr.msk.f32.gmra.mrb[34].mxu0 %vm263_vm1, %v222_v39  ;;  %1516 = vmatmul.mubr.msk.f32.gmra.mrb[34].mxu1 %vm263_vm1, %v247_v40 }
  0x5b   : > { %1443 = vmatprep.mubr.msk.f32.mxu0 %vm1662_vm0, %v1663_v1  ;;  %1518 = vmatprep.mubr.msk.f32.mxu1 %vm1662_vm0, %v1663_v1 }
  0x5e   : > { %1444 = vmatmul.mubr.msk.f32.gmra.mrb[36].mxu0 %vm263_vm1, %v223_v41  ;;  %1519 = vmatmul.mubr.msk.f32.gmra.mrb[36].mxu1 %vm263_vm1, %v248_v42 }
  0x5f   : > { %1446 = vmatprep.mubr.msk.f32.mxu0 %vm1662_vm0, %v1663_v1  ;;  %1521 = vmatprep.mubr.msk.f32.mxu1 %vm1662_vm0, %v1663_v1 }
  0x62   : > { %1447 = vmatmul.mubr.msk.f32.gmra.mrb[38].mxu0 %vm263_vm1, %v224_v43  ;;  %1522 = vmatmul.mubr.msk.f32.gmra.mrb[38].mxu1 %vm263_vm1, %v249_v44 }
  0x63   : > { %1449 = vmatprep.mubr.msk.f32.mxu0 %vm1662_vm0, %v1663_v1  ;;  %1524 = vmatprep.mubr.msk.f32.mxu1 %vm1662_vm0, %v1663_v1 }
  0x66   : > { %1450 = vmatmul.mubr.msk.f32.gmra.mrb[40].mxu0 %vm263_vm1, %v225_v45  ;;  %1525 = vmatmul.mubr.msk.f32.gmra.mrb[40].mxu1 %vm263_vm1, %v250_v46 }
  0x67   : > { %1452 = vmatprep.mubr.msk.f32.mxu0 %vm1662_vm0, %v1663_v1  ;;  %1527 = vmatprep.mubr.msk.f32.mxu1 %vm1662_vm0, %v1663_v1 }
  0x6a   : > { %1453 = vmatmul.mubr.msk.f32.gmra.mrb[42].mxu0 %vm263_vm1, %v226_v47  ;;  %1528 = vmatmul.mubr.msk.f32.gmra.mrb[42].mxu1 %vm263_vm1, %v251_v48 }
  0x6b   : > { %1455 = vmatprep.mubr.msk.f32.mxu0 %vm1662_vm0, %v1663_v1  ;;  %1530 = vmatprep.mubr.msk.f32.mxu1 %vm1662_vm0, %v1663_v1 }
  0x6e   : > { %1456 = vmatmul.mubr.msk.f32.gmra.mrb[44].mxu0 %vm263_vm1, %v227_v49  ;;  %1531 = vmatmul.mubr.msk.f32.gmra.mrb[44].mxu1 %vm263_vm1, %v252_v50 }
  0x6f   : > { %1458 = vmatprep.mubr.msk.f32.mxu0 %vm1662_vm0, %v1663_v1  ;;  %1533 = vmatprep.mubr.msk.f32.mxu1 %vm1662_vm0, %v1663_v1 }
  0x72   : > { %1459 = vmatmul.mubr.msk.f32.gmra.mrb[46].mxu0 %vm263_vm1, %v228_v51  ;;  %1534 = vmatmul.mubr.msk.f32.gmra.mrb[46].mxu1 %vm263_vm1, %v253_v52 }
  0x73   : > { %1461 = vmatprep.mubr.msk.f32.mxu0 %vm1662_vm0, %v1663_v1  ;;  %vm1110_vm0 = vcmask 64512  }
  0x76   : > { %1462 = vmatmul.mubr.msk.f32.gmra.mrb[48].mxu0 %vm263_vm1, %v229_v53 }
  0xe9   : > { %v477_v55 = vpop.f32.mrb[0].mxu0  ;;  %v602_v56 = vpop.f32.mrb[0].mxu1 }
  0xea   : > { %v478_v57 = vadd.f32 %v1907_v54, %v477_v55  ;;  %v1391_v58 = vpop.f32.mrb[1].mxu0  ;;  %v1466_v59 = vpop.f32.mrb[1].mxu1  ;;  %v1938_v30 = vadd.f32 %v1907_v54, %v602_v56 }
  0xec   : > { %v770_v60 = vmul.f32 1.442695, %v478_v57  ;;  %vm721_vm2 = vcmp.gt.f32.partialorder %v478_v57, 0.0  ;;  %v820_v44 = vmul.f32 1.442695, %v1938_v30  ;;  %vm746_vm1 = vcmp.gt.f32.partialorder %v1938_v30, 0.0 }
  0xed   : > { %v482_v61 = vpop.f32.mrb[2].mxu0  ;;  %v607_v62 = vpop.f32.mrb[2].mxu1 }
  0xee   : > { %1554 = vpow2.f32 %v770_v60  ;;  %v483_v63 = vadd.f32 %v1907_v54, %v482_v61  ;;  %v1912_v0 = vadd.f32 %v1907_v54, %v607_v62  ;;  %v1394_v1 = vpop.f32.mrb[3].mxu0  ;;  %v1469_v2 = vpop.f32.mrb[3].mxu1 }
  0xf0   : > { %v772_v3 = vmul.f32 1.442695, %v483_v63  ;;  %v822_v4 = vmul.f32 1.442695, %v1912_v0  ;;  %vm722_vm3 = vcmp.gt.f32.partialorder %v483_v63, 0.0  ;;  %vm747_vm5 = vcmp.gt.f32.partialorder %v1912_v0, 0.0 }
  0xf1   : > { %v487_v5 = vpop.f32.mrb[4].mxu0  ;;  %v612_v6 = vpop.f32.mrb[4].mxu1 }
  0xf2   : > { %1556 = vpow2.f32 %v772_v3  ;;  %v1916_v7 = vadd.f32 %v1907_v54, %v487_v5  ;;  %v1919_v8 = vadd.f32 %v1907_v54, %v612_v6  ;;  %v1397_v9 = vpop.f32.mrb[5].mxu0  ;;  %v1472_v10 = vpop.f32.mrb[5].mxu1 }
  0xf3   : > { %1558 = vpow2.f32 %v822_v4 }
  0xf4   : > { %v774_v11 = vmul.f32 1.442695, %v1916_v7  ;;  %v824_v12 = vmul.f32 1.442695, %v1919_v8  ;;  %vm723_vm4 = vcmp.gt.f32.partialorder %v1916_v7, 0.0  ;;  %vm748_vm6 = vcmp.gt.f32.partialorder %v1919_v8, 0.0 }
  0xf5   : > { %v492_v13 = vpop.f32.mrb[6].mxu0  ;;  %v617_v14 = vpop.f32.mrb[6].mxu1 }
  0xf6   : > { %1560 = vpow2.f32 %v774_v11  ;;  %v1924_v15 = vadd.f32 %v1907_v54, %v492_v13  ;;  %v1927_v16 = vadd.f32 %v1907_v54, %v617_v14  ;;  %v1400_v17 = vpop.f32.mrb[7].mxu0  ;;  %v1475_v18 = vpop.f32.mrb[7].mxu1 }
  0xf7   : > { %1562 = vpow2.f32 %v824_v12 }
  0xf8   : > { %v1555_v19 = vpop.eup %1554  ;;  %v776_v20 = vmul.f32 1.442695, %v1924_v15  ;;  %v826_v21 = vmul.f32 1.442695, %v1927_v16  ;;  %vm724_vm7 = vcmp.gt.f32.partialorder %v1924_v15, 0.0  ;;  %vm749_vm9 = vcmp.gt.f32.partialorder %v1927_v16, 0.0 }
  0xf9   : > { %v497_v22 = vpop.f32.mrb[8].mxu0  ;;  %v622_v23 = vpop.f32.mrb[8].mxu1  ;;  %v1282_v28 = vadd.f32 -1.0, %v1555_v19 }
  0xfa   : > { %1564 = vpow2.f32 %v776_v20  ;;  %v1932_v24 = vadd.f32 %v1907_v54, %v497_v22  ;;  %v1935_v25 = vadd.f32 %v1907_v54, %v622_v23  ;;  %v1403_v26 = vpop.f32.mrb[9].mxu0  ;;  %v1478_v27 = vpop.f32.mrb[9].mxu1 }
  0xfb   : > { %1566 = vpow2.f32 %v826_v21  ;;  %v917_v41 = vsel %vm721_vm2, %v478_v57, %v1282_v28 }
  0xfc   : > { %v1557_v29 = vpop.eup %1556  ;;  %v778_v31 = vmul.f32 1.442695, %v1932_v24  ;;  %v828_v34 = vmul.f32 1.442695, %v1935_v25  ;;  %vm725_vm8 = vcmp.gt.f32.partialorder %v1932_v24, 0.0  ;;  %vm750_vm10 = vcmp.gt.f32.partialorder %v1935_v25, 0.0 }
  0xfd   : > { %v1559_v32 = vpop.eup %1558  ;;  %v1283_v33 = vadd.f32 -1.0, %v1557_v29  ;;  %v502_v35 = vpop.f32.mrb[10].mxu0 }
  0xfe   : > { %v627_v36 = vpop.f32.mrb[10].mxu1  ;;  %1568 = vpow2.f32 %v778_v31  ;;  %v1943_v37 = vadd.f32 %v1907_v54, %v502_v35  ;;  %v1406_v39 = vpop.f32.mrb[11].mxu0  ;;  %v1308_v46 = vadd.f32 -1.0, %v1559_v32 }
  0xff   : > { %v1946_v38 = vadd.f32 %v1907_v54, %v627_v36  ;;  %v1481_v40 = vpop.f32.mrb[11].mxu1  ;;  %v918_v42 = vsel %vm722_vm3, %v483_v63, %v1283_v33  ;;  %1570 = vpow2.f32 %v828_v34 }
 0x100   : > { %v1561_v43 = vpop.eup %1560  ;;  %v1949_v45 = vadd.f32 %v918_v42, %v917_v41  ;;  %v780_v47 = vmul.f32 1.442695, %v1943_v37  ;;  %v1964_v61 = vsel %vm747_vm5, %v1912_v0, %v1308_v46  ;;  %vm726_vm11 = vcmp.gt.f32.partialorder %v1943_v37, 0.0 }
 0x101   : > { %v1563_v48 = vpop.eup %1562  ;;  %v1284_v49 = vadd.f32 -1.0, %v1561_v43  ;;  %v830_v50 = vmul.f32 1.442695, %v1946_v38  ;;  %v507_v51 = vpop.f32.mrb[12].mxu0  ;;  %vm751_vm12 = vcmp.gt.f32.partialorder %v1946_v38, 0.0 }
 0x102   : > { %v632_v52 = vpop.f32.mrb[12].mxu1  ;;  %v1309_v53 = vadd.f32 -1.0, %v1563_v48  ;;  %1572 = vpow2.f32 %v780_v47  ;;  %v1955_v55 = vadd.f32 %v1907_v54, %v507_v51  ;;  %v1409_v57 = vpop.f32.mrb[13].mxu0 }
 0x103   : > { %v1958_v56 = vadd.f32 %v1907_v54, %v632_v52  ;;  %v1484_v58 = vpop.f32.mrb[13].mxu1  ;;  %v919_v59 = vsel %vm723_vm4, %v1916_v7, %v1284_v49  ;;  %1574 = vpow2.f32 %v830_v50 }
 0x104   : > { %v1565_v60 = vpop.eup %1564  ;;  %v1966_v62 = vadd.f32 %v919_v59, %v918_v42  ;;  %v1969_v63 = vsel %vm748_vm6, %v1919_v8, %v1309_v53  ;;  %v782_v1 = vmul.f32 1.442695, %v1955_v55  ;;  %1576 = vpow2.f32 %v820_v44 }
 0x105   : > { %v1567_v2 = vpop.eup %1566  ;;  %v1974_v3 = vadd.f32 %v1969_v63, %v1964_v61  ;;  %v1285_v4 = vadd.f32 -1.0, %v1565_v60  ;;  %v832_v5 = vmul.f32 1.442695, %v1958_v56  ;;  %v512_v6 = vpop.f32.mrb[14].mxu0  ;;  %vm727_vm13 = vcmp.gt.f32.partialorder %v1955_v55, 0.0 }
 0x106   : > { %v637_v7 = vpop.f32.mrb[14].mxu1  ;;  %1578 = vpow2.f32 %v782_v1  ;;  %v1979_v0 = vadd.f32 %v1907_v54, %v512_v6  ;;  %v1412_v9 = vpop.f32.mrb[15].mxu0  ;;  %v1310_v14 = vadd.f32 -1.0, %v1567_v2  ;;  %vm752_vm14 = vcmp.gt.f32.partialorder %v1958_v56, 0.0 }
 0x107   : > { %v1982_v8 = vadd.f32 %v1907_v54, %v637_v7  ;;  %v1487_v10 = vpop.f32.mrb[15].mxu1  ;;  %v920_v11 = vsel %vm724_vm7, %v1924_v15, %v1285_v4  ;;  %1580 = vpow2.f32 %v832_v5 }
 0x108   : > { %v1569_v12 = vpop.eup %1568  ;;  %v1985_v13 = vadd.f32 %v920_v11, %v919_v59  ;;  %v784_v17 = vmul.f32 1.442695, %v1979_v0  ;;  %v2000_v32 = vsel %vm749_vm9, %v1927_v16, %v1310_v14  ;;  %vm728_vm15 = vcmp.gt.f32.partialorder %v1979_v0, 0.0 }
 0x109   : > { %v1571_v18 = vpop.eup %1570  ;;  %v1286_v19 = vadd.f32 -1.0, %v1569_v12  ;;  %v834_v20 = vmul.f32 1.442695, %v1982_v8  ;;  %v517_v21 = vpop.f32.mrb[16].mxu0  ;;  %vm753_vm2 = vcmp.gt.f32.partialorder %v1982_v8, 0.0 }
 0x10a   : > { %v642_v22 = vpop.f32.mrb[16].mxu1  ;;  %v1311_v23 = vadd.f32 -1.0, %v1571_v18  ;;  %1582 = vpow2.f32 %v784_v17  ;;  %v1991_v26 = vadd.f32 %v1907_v54, %v517_v21  ;;  %v1415_v27 = vpop.f32.mrb[17].mxu0 }
 0x10b   : > { %v1994_v15 = vadd.f32 %v1907_v54, %v642_v22  ;;  %v1490_v28 = vpop.f32.mrb[17].mxu1  ;;  %v921_v29 = vsel %vm725_vm8, %v1932_v24, %v1286_v19  ;;  %1584 = vpow2.f32 %v834_v20 }
 0x10c   : > { %v1573_v31 = vpop.eup %1572  ;;  %v2002_v33 = vadd.f32 %v921_v29, %v920_v11  ;;  %v2005_v34 = vsel %vm750_vm10, %v1935_v25, %v1311_v23  ;;  %v786_v35 = vmul.f32 1.442695, %v1991_v26  ;;  %vm729_vm3 = vcmp.gt.f32.partialorder %v1991_v26, 0.0 }
 0x10d   : > { %v1575_v36 = vpop.eup %1574  ;;  %v1287_v39 = vadd.f32 -1.0, %v1573_v31  ;;  %v836_v24 = vmul.f32 1.442695, %v1994_v15  ;;  %v522_v40 = vpop.f32.mrb[18].mxu0  ;;  %v2012_v42 = vadd.f32 %v2005_v34, %v2000_v32  ;;  %vm754_vm4 = vcmp.gt.f32.partialorder %v1994_v15, 0.0 }
 0x10e   : > { %v647_v41 = vpop.f32.mrb[18].mxu1  ;;  %v1312_v16 = vadd.f32 -1.0, %v1575_v36  ;;  %1586 = vpow2.f32 %v786_v35  ;;  %v2015_v43 = vadd.f32 %v1907_v54, %v522_v40  ;;  %v1418_v44 = vpop.f32.mrb[19].mxu0 }
 0x10f   : > { %v2018_v25 = vadd.f32 %v1907_v54, %v647_v41  ;;  %v1493_v46 = vpop.f32.mrb[19].mxu1  ;;  %v1577_v47 = vpop.eup %1576  ;;  %v922_v48 = vsel %vm726_vm11, %v1943_v37, %v1287_v39  ;;  %1588 = vpow2.f32 %v836_v24 }
 0x110   : > { %v1579_v49 = vpop.eup %1578  ;;  %v2022_v50 = vadd.f32 %v922_v48, %v921_v29  ;;  %v2025_v51 = vsel %vm751_vm12, %v1946_v38, %v1312_v16  ;;  %v788_v52 = vmul.f32 1.442695, %v2015_v43  ;;  %v1307_v9 = vadd.f32 -1.0, %v1577_v47 }
 0x111   : > { %v1581_v53 = vpop.eup %1580  ;;  %v2030_v57 = vadd.f32 %v2025_v51, %v2005_v34  ;;  %v1288_v58 = vadd.f32 -1.0, %v1579_v49  ;;  %v838_v37 = vmul.f32 1.442695, %v2018_v25  ;;  %v527_v59 = vpop.f32.mrb[20].mxu0  ;;  %vm730_vm5 = vcmp.gt.f32.partialorder %v2015_v43, 0.0 }
 0x112   : > { %v652_v60 = vpop.f32.mrb[20].mxu1  ;;  %v1313_v1 = vadd.f32 -1.0, %v1581_v53  ;;  %1590 = vpow2.f32 %v788_v52  ;;  %v2035_v2 = vadd.f32 %v1907_v54, %v527_v59  ;;  %v1421_v4 = vpop.f32.mrb[21].mxu0  ;;  %v2066_v31 = vsel %vm746_vm1, %v1938_v30, %v1307_v9 }
 0x113   : > { %v2038_v38 = vadd.f32 %v1907_v54, %v652_v60  ;;  %v1496_v5 = vpop.f32.mrb[21].mxu1  ;;  %v923_v6 = vsel %vm727_vm13, %v1955_v55, %v1288_v58  ;;  %1592 = vpow2.f32 %v838_v37  ;;  %vm755_vm6 = vcmp.gt.f32.partialorder %v2018_v25, 0.0 }
 0x114   : > { %v1583_v7 = vpop.eup %1582  ;;  %v2042_v10 = vadd.f32 %v923_v6, %v922_v48  ;;  %v2045_v11 = vsel %vm752_vm14, %v1958_v56, %v1313_v1  ;;  %v790_v12 = vmul.f32 1.442695, %v2035_v2  ;;  %vm731_vm7 = vcmp.gt.f32.partialorder %v2035_v2, 0.0 }
 0x115   : > { %v1585_v14 = vpop.eup %1584  ;;  %v2050_v17 = vadd.f32 %v2045_v11, %v2025_v51  ;;  %v1289_v55 = vadd.f32 -1.0, %v1583_v7  ;;  %v840_v18 = vmul.f32 1.442695, %v2038_v38  ;;  %v532_v19 = vpop.f32.mrb[22].mxu0  ;;  %vm756_vm8 = vcmp.gt.f32.partialorder %v2038_v38, 0.0 }
 0x116   : > { %v657_v20 = vpop.f32.mrb[22].mxu1  ;;  %v1314_v21 = vadd.f32 -1.0, %v1585_v14  ;;  %1594 = vpow2.f32 %v790_v12  ;;  %v2055_v56 = vadd.f32 %v1907_v54, %v532_v19  ;;  %v1424_v23 = vpop.f32.mrb[23].mxu0 }
 0x117   : > { %v2058_v22 = vadd.f32 %v1907_v54, %v657_v20  ;;  %v1499_v27 = vpop.f32.mrb[23].mxu1  ;;  %v2062_v28 = vsel %vm728_vm15, %v1979_v0, %v1289_v55  ;;  %1596 = vpow2.f32 %v840_v18  ;;  %v988_v0 = vadd.f32 %v1964_v61, %v2066_v31 }
 0x118   : > { %v1587_v29 = vpop.eup %1586  ;;  %v1002_v35 = vadd.f32 %v1949_v45, %v2062_v28  ;;  %v2071_v36 = vsel %vm753_vm2, %v1982_v8, %v1314_v21  ;;  %v792_v39 = vmul.f32 1.442695, %v2055_v56  ;;  %vm732_vm9 = vcmp.gt.f32.partialorder %v2055_v56, 0.0 }
 0x119   : > { %v1589_v24 = vpop.eup %1588  ;;  %v1290_v40 = vadd.f32 -1.0, %v1587_v29  ;;  %v537_v30 = vpop.f32.mrb[24].mxu0  ;;  %v842_v45 = vmul.f32 1.442695, %v2058_v22  ;;  %v1024_v47 = vadd.f32 %v988_v0, %v2071_v36  ;;  %vm757_vm10 = vcmp.gt.f32.partialorder %v2058_v22, 0.0 }
 0x11a   : > { %v662_v41 = vpop.f32.mrb[24].mxu1  ;;  %v1315_v16 = vadd.f32 -1.0, %v1589_v24  ;;  %1598 = vpow2.f32 %v792_v39  ;;  %v2081_v8 = vadd.f32 %v1907_v54, %v537_v30  ;;  %v1427_v44 = vpop.f32.mrb[25].mxu0 }
 0x11b   : > { %v1502_v46 = vpop.f32.mrb[25].mxu1  ;;  %v2085_v48 = vsel %vm729_vm3, %v1991_v26, %v1290_v40  ;;  %v2089_v49 = vadd.f32 %v1907_v54, %v662_v41  ;;  %1600 = vpow2.f32 %v842_v45 }
 0x11c   : > { %v1591_v52 = vpop.eup %1590  ;;  %v1003_v53 = vadd.f32 %v1966_v62, %v2085_v48  ;;  %v1038_v58 = vadd.f32 %v1002_v35, %v2085_v48  ;;  %v2097_v37 = vsel %vm754_vm4, %v1994_v15, %v1315_v16  ;;  %v794_v6 = vmul.f32 1.442695, %v2081_v8 }
 0x11d   : > { %v1593_v59 = vpop.eup %1592  ;;  %v1060_v26 = vadd.f32 %v1024_v47, %v2097_v37  ;;  %v1291_v60 = vadd.f32 -1.0, %v1591_v52  ;;  %v1025_v62 = vadd.f32 %v1974_v3, %v2097_v37  ;;  %v542_v1 = vpop.f32.mrb[26].mxu0  ;;  %v844_v14 = vmul.f32 1.442695, %v2089_v49 }
 0x11e   : > { %v667_v4 = vpop.f32.mrb[26].mxu1  ;;  %v1074_v15 = vmul.f32 0.25, %v1038_v58  ;;  %v1316_v5 = vadd.f32 -1.0, %v1593_v59  ;;  %v1430_v7 = vpop.f32.mrb[27].mxu0  ;;  %1602 = vpow2.f32 %v794_v6  ;;  %v2130_v0 = vadd.f32 %v1907_v54, %v542_v1 }
 0x11f   : > { %v1096_v9 = vmul.f32 0.25, %v1060_v26  ;;  %v926_v12 = vsel %vm730_vm5, %v2015_v43, %v1291_v60  ;;  %v1505_v3 = vpop.f32.mrb[27].mxu1  ;;  %1604 = vpow2.f32 %v844_v14  ;;  %v2136_v16 = vadd.f32 %v1907_v54, %v667_v4 }
 0x120   : > { %v1595_v55 = vpop.eup %1594  ;;  %1111 = vst.msk [vmem:[%s2102_s28] sm:$0xff] %vm1110_vm0, %v1074_v15  ;;  %v2118_v18 = vadd.f32 %v926_v12, %v2085_v48  ;;  %v1004_v19 = vadd.f32 %v1985_v13, %v926_v12  ;;  %v1039_v20 = vadd.f32 %v1003_v53, %v926_v12  ;;  %v951_v21 = vsel %vm755_vm6, %v2018_v25, %v1316_v5 }
 0x121   : > { %v1597_v23 = vpop.eup %1596  ;;  %1133 = vst.msk [vmem:[%s2102_s28 + $0xb0] sm:$0xff] %vm1110_vm0, %v1096_v9  ;;  %v2127_v43 = vadd.f32 %v951_v21, %v2097_v37  ;;  %v1061_v27 = vadd.f32 %v1025_v62, %v951_v21  ;;  %v1292_v29 = vadd.f32 -1.0, %v1595_v55  ;;  %v547_v35 = vpop.f32.mrb[28].mxu0  ;;  %v796_v59 = vmul.f32 1.442695, %v2130_v0 }
 0x122   : > { %v672_v39 = vpop.f32.mrb[28].mxu1  ;;  %v1075_v24 = vmul.f32 0.25, %v1039_v20  ;;  %v1317_v13 = vadd.f32 -1.0, %v1597_v23  ;;  %v1433_v25 = vpop.f32.mrb[29].mxu0  ;;  %v2139_v45 = vadd.f32 %v1907_v54, %v547_v35  ;;  %v2159_v62 = vadd.f32 %v2071_v36, %v2045_v11 }
 0x123   : > { %v1508_v40 = vpop.f32.mrb[29].mxu1  ;;  %v1097_v30 = vmul.f32 0.25, %v1061_v27  ;;  %v927_v41 = vsel %vm731_vm7, %v2035_v2, %v1292_v29  ;;  %v846_v1 = vmul.f32 1.442695, %v2136_v16  ;;  %1606 = vpow2.f32 %v796_v59 }
 0x124   : > { %v1599_v44 = vpop.eup %1598  ;;  %1112 = vst.msk [vmem:[%s2102_s28 + $0x8] sm:$0xff] %vm1110_vm0, %v1075_v24  ;;  %v2143_v46 = vadd.f32 %v927_v41, %v926_v12  ;;  %v1005_v47 = vadd.f32 %v2002_v33, %v927_v41  ;;  %v1040_v52 = vadd.f32 %v1004_v19, %v927_v41  ;;  %v2149_v53 = vsel %vm756_vm8, %v2038_v38, %v1317_v13 }
 0x125   : > { %1134 = vst.msk [vmem:[%s2102_s28 + $0xb8] sm:$0xff] %vm1110_vm0, %v1097_v30  ;;  %v1026_v2 = vadd.f32 %v2012_v42, %v2149_v53  ;;  %v1293_v58 = vadd.f32 -1.0, %v1599_v44  ;;  %v552_v26 = vpop.f32.mrb[30].mxu0  ;;  %v677_v60 = vpop.f32.mrb[30].mxu1  ;;  %v798_v5 = vmul.f32 1.442695, %v2139_v45  ;;  %1608 = vpow2.f32 %v846_v1 }
 0x126   : > { %v1601_v33 = vpop.eup %1600  ;;  %v1076_v38 = vmul.f32 0.25, %v1040_v52  ;;  %v1436_v4 = vpop.f32.mrb[31].mxu0  ;;  %v2178_v3 = vadd.f32 %v1907_v54, %v672_v39  ;;  %vm733_vm11 = vcmp.gt.f32.partialorder %v2081_v8, 0.0  ;;  %vm758_vm12 = vcmp.gt.f32.partialorder %v2089_v49, 0.0 }
 0x127   : > { %v928_v42 = vsel %vm732_vm9, %v2055_v56, %v1293_v58  ;;  %v1318_v15 = vadd.f32 -1.0, %v1601_v33  ;;  %v1511_v6 = vpop.f32.mrb[31].mxu1  ;;  %1610 = vpow2.f32 %v798_v5  ;;  %v2175_v56 = vadd.f32 %v2085_v48, %v2062_v28 }
 0x128   : > { %1113 = vst.msk [vmem:[%s2102_s28 + $0x10] sm:$0xff] %vm1110_vm0, %v1076_v38  ;;  %v2167_v7 = vadd.f32 %v928_v42, %v927_v41  ;;  %v1006_v9 = vadd.f32 %v2022_v50, %v928_v42  ;;  %v1041_v12 = vadd.f32 %v1005_v47, %v928_v42  ;;  %v1603_v29 = vpop.eup %1602  ;;  %v848_v28 = vmul.f32 1.442695, %v2178_v3 }
 0x129   : > { %v2171_v14 = vsel %vm757_vm10, %v2058_v22, %v1318_v15  ;;  %v557_v55 = vpop.f32.mrb[32].mxu0  ;;  %v682_v19 = vpop.f32.mrb[32].mxu1  ;;  %v2184_v22 = vadd.f32 %v1907_v54, %v552_v26  ;;  %v2189_v48 = vadd.f32 %v1907_v54, %v677_v60  ;;  %v1294_v24 = vadd.f32 -1.0, %v1603_v29 }
 0x12a   : > { %v1077_v20 = vmul.f32 0.25, %v1041_v12  ;;  %v1027_v50 = vadd.f32 %v2030_v57, %v2171_v14  ;;  %v1062_v21 = vadd.f32 %v1026_v2, %v2171_v14  ;;  %v1439_v23 = vpop.f32.mrb[33].mxu0  ;;  %v1514_v27 = vpop.f32.mrb[33].mxu1  ;;  %v2192_v35 = vadd.f32 %v1907_v54, %v557_v55 }
 0x12b   : > { %v1605_v57 = vpop.eup %1604  ;;  %v800_v13 = vmul.f32 1.442695, %v2184_v22  ;;  %vm734_vm13 = vcmp.gt.f32.partialorder %v2130_v0, 0.0  ;;  %1612 = vpow2.f32 %v848_v28  ;;  %v850_v40 = vmul.f32 1.442695, %v2189_v48 }
 0x12c   : > { %1114 = vst.msk [vmem:[%s2102_s28 + $0x18] sm:$0xff] %vm1110_vm0, %v1077_v20  ;;  %v1098_v39 = vmul.f32 0.25, %v1062_v21  ;;  %v1319_v25 = vadd.f32 -1.0, %v1605_v57  ;;  %v929_v44 = vsel %vm733_vm11, %v2081_v8, %v1294_v24  ;;  %vm759_vm14 = vcmp.gt.f32.partialorder %v2136_v16, 0.0 }
 0x12d   : > { %v562_v30 = vpop.f32.mrb[34].mxu0  ;;  %v687_v41 = vpop.f32.mrb[34].mxu1  ;;  %1614 = vpow2.f32 %v800_v13  ;;  %v802_v47 = vmul.f32 1.442695, %v2192_v35  ;;  %v2207_v58 = vadd.f32 %v929_v44, %v928_v42  ;;  %v1042_v59 = vadd.f32 %v1006_v9, %v929_v44 }
 0x12e   : > { %1135 = vst.msk [vmem:[%s2102_s28 + $0xc0] sm:$0xff] %vm1110_vm0, %v1098_v39  ;;  %v1442_v52 = vpop.f32.mrb[35].mxu0  ;;  %v1517_v2 = vpop.f32.mrb[35].mxu1  ;;  %v2212_v26 = vsel %vm758_vm12, %v2089_v49, %v1319_v25  ;;  %v1007_v60 = vadd.f32 %v2042_v10, %v929_v44  ;;  %1616 = vpow2.f32 %v850_v40  ;;  %v2219_v38 = vadd.f32 %v1907_v54, %v682_v19 }
 0x12f   : > { %v1028_v8 = vadd.f32 %v2050_v17, %v2212_v26  ;;  %v1063_v33 = vadd.f32 %v1027_v50, %v2212_v26  ;;  %v1607_v1 = vpop.eup %1606  ;;  %v1078_v4 = vmul.f32 0.25, %v1042_v59  ;;  %1618 = vpow2.f32 %v802_v47 }
 0x130   : > { %v2222_v42 = vadd.f32 %v1907_v54, %v562_v30  ;;  %v2225_v49 = vadd.f32 %v1907_v54, %v687_v41  ;;  %v1609_v17 = vpop.eup %1608  ;;  %v1295_v6 = vadd.f32 -1.0, %v1607_v1  ;;  %vm735_vm15 = vcmp.gt.f32.partialorder %v2139_v45, 0.0 }
 0x131   : > { %v567_v10 = vpop.f32.mrb[36].mxu0  ;;  %v692_v15 = vpop.f32.mrb[36].mxu1  ;;  %v1099_v5 = vmul.f32 0.25, %v1063_v33  ;;  %v852_v9 = vmul.f32 1.442695, %v2219_v38  ;;  %1115 = vst.msk [vmem:[%s2102_s28 + $0x20] sm:$0xff] %vm1110_vm0, %v1078_v4 }
 0x132   : > { %v1445_v12 = vpop.f32.mrb[37].mxu0  ;;  %v1611_v55 = vpop.eup %1610  ;;  %v1320_v19 = vadd.f32 -1.0, %v1609_v17  ;;  %vm760_vm1 = vcmp.gt.f32.partialorder %v2178_v3, 0.0  ;;  %vm736_vm2 = vcmp.gt.f32.partialorder %v2184_v22, 0.0  ;;  %v804_v20 = vmul.f32 1.442695, %v2222_v42 }
 0x133   : > { %v1520_v50 = vpop.f32.mrb[37].mxu1  ;;  %1136 = vst.msk [vmem:[%s2102_s28 + $0xc8] sm:$0xff] %vm1110_vm0, %v1099_v5  ;;  %v930_v21 = vsel %vm734_vm13, %v2130_v0, %v1295_v6  ;;  %v1296_v23 = vadd.f32 -1.0, %v1611_v55  ;;  %vm761_vm3 = vcmp.gt.f32.partialorder %v2189_v48, 0.0  ;;  %1620 = vpow2.f32 %v852_v9 }
 0x134   : > { %v854_v27 = vmul.f32 1.442695, %v2225_v49  ;;  %v2241_v29 = vadd.f32 %v930_v21, %v929_v44  ;;  %v1043_v28 = vadd.f32 %v1007_v60, %v930_v21  ;;  %v2246_v57 = vsel %vm759_vm14, %v2136_v16, %v1320_v19 }
 0x135   : > { %vm737_vm4 = vcmp.gt.f32.partialorder %v2192_v35, 0.0  ;;  %1622 = vpow2.f32 %v804_v20  ;;  %v572_v39 = vpop.f32.mrb[38].mxu0  ;;  %v697_v24 = vpop.f32.mrb[38].mxu1  ;;  %v1029_v0 = vadd.f32 %v2159_v62, %v2246_v57  ;;  %v1064_v13 = vadd.f32 %v1028_v8, %v2246_v57 }
 0x136   : > { %v2255_v25 = vsel %vm735_vm15, %v2139_v45, %v1296_v23  ;;  %1624 = vpow2.f32 %v854_v27  ;;  %v1448_v40 = vpop.f32.mrb[39].mxu0  ;;  %v1523_v16 = vpop.f32.mrb[39].mxu1  ;;  %v1079_v41 = vmul.f32 0.25, %v1043_v28  ;;  %v2261_v62 = vadd.f32 %v2171_v14, %v2149_v53 }
 0x137   : > { %v1613_v30 = vpop.eup %1612  ;;  %v1008_v44 = vadd.f32 %v2175_v56, %v2255_v25  ;;  %v2264_v47 = vadd.f32 %v1907_v54, %v567_v10  ;;  %v1100_v2 = vmul.f32 0.25, %v1064_v13  ;;  %v2267_v59 = vadd.f32 %v1907_v54, %v692_v15 }
 0x138   : > { %v1615_v52 = vpop.eup %1614  ;;  %v1321_v45 = vadd.f32 -1.0, %v1613_v30  ;;  %v2271_v60 = vadd.f32 %v2212_v26, %v2171_v14  ;;  %v994_v56 = vadd.f32 %v2097_v37, %v2071_v36  ;;  %1116 = vst.msk [vmem:[%s2102_s28 + $0x28] sm:$0xff] %vm1110_vm0, %v1079_v41  ;;  %vm762_vm5 = vcmp.gt.f32.partialorder %v2219_v38, 0.0 }
 0x139   : > { %v1297_v53 = vadd.f32 -1.0, %v1615_v52  ;;  %v806_v8 = vmul.f32 1.442695, %v2264_v47  ;;  %v2279_v33 = vpop.f32.mrb[40].mxu0  ;;  %v2281_v1 = vpop.f32.mrb[40].mxu1  ;;  %1137 = vst.msk [vmem:[%s2102_s28 + $0xd0] sm:$0xff] %vm1110_vm0, %v1100_v2  ;;  %v2293_v10 = vadd.f32 %v1907_v54, %v572_v39  ;;  %v2305_v23 = vadd.f32 %v1907_v54, %v697_v24 }
 0x13a   : > { %v1617_v4 = vpop.eup %1616  ;;  %v2288_v14 = vsel %vm760_vm1, %v2178_v3, %v1321_v45  ;;  %vm738_vm6 = vcmp.gt.f32.partialorder %v2222_v42, 0.0  ;;  %v856_v37 = vmul.f32 1.442695, %v2267_v59  ;;  %v1451_v15 = vpop.f32.mrb[41].mxu0  ;;  %vm763_vm7 = vcmp.gt.f32.partialorder %v2225_v49, 0.0 }
 0x13b   : > { %v1526_v17 = vpop.f32.mrb[41].mxu1  ;;  %v1619_v5 = vpop.eup %1618  ;;  %v1030_v6 = vadd.f32 %v994_v56, %v2288_v14  ;;  %v1065_v9 = vadd.f32 %v1029_v0, %v2288_v14  ;;  %v932_v12 = vsel %vm736_vm2, %v2184_v22, %v1297_v53  ;;  %v1322_v3 = vadd.f32 -1.0, %v1617_v4 }
 0x13c   : > { %v1009_v55 = vadd.f32 %v2118_v18, %v932_v12  ;;  %v1044_v19 = vadd.f32 %v1008_v44, %v932_v12  ;;  %v1298_v20 = vadd.f32 -1.0, %v1619_v5  ;;  %1626 = vpow2.f32 %v806_v8 }
 0x13d   : > { %v1101_v50 = vmul.f32 0.25, %v1065_v9  ;;  %v957_v21 = vsel %vm761_vm3, %v2189_v48, %v1322_v3  ;;  %1628 = vpow2.f32 %v856_v37  ;;  %v582_v27 = vpop.f32.mrb[42].mxu0  ;;  %v707_v28 = vpop.f32.mrb[42].mxu1  ;;  %vm739_vm8 = vcmp.gt.f32.partialorder %v2264_v47, 0.0 }
 0x13e   : > { %v1621_v22 = vpop.eup %1620  ;;  %v1080_v39 = vmul.f32 0.25, %v1044_v19  ;;  %v1066_v0 = vadd.f32 %v1030_v6, %v957_v21  ;;  %v933_v18 = vsel %vm737_vm4, %v2192_v35, %v1298_v20  ;;  %v1031_v13 = vadd.f32 %v2127_v43, %v957_v21  ;;  %v1454_v40 = vpop.f32.mrb[43].mxu0 }
 0x13f   : > { %v1529_v16 = vpop.f32.mrb[43].mxu1  ;;  %v1623_v30 = vpop.eup %1622  ;;  %1138 = vst.msk [vmem:[%s2102_s28 + $0xd8] sm:$0xff] %vm1110_vm0, %v1101_v50  ;;  %v2313_v48 = vadd.f32 %v933_v18, %v932_v12  ;;  %v1010_v24 = vadd.f32 %v2143_v46, %v933_v18  ;;  %v1045_v41 = vadd.f32 %v1009_v55, %v933_v18  ;;  %v1323_v44 = vadd.f32 -1.0, %v1621_v22 }
 0x140   : > { %v1625_v52 = vpop.eup %1624  ;;  %1117 = vst.msk [vmem:[%s2102_s28 + $0x30] sm:$0xff] %vm1110_vm0, %v1080_v39  ;;  %v1102_v2 = vmul.f32 0.25, %v1066_v0  ;;  %v1299_v45 = vadd.f32 -1.0, %v1623_v30  ;;  %v808_v43 = vmul.f32 1.442695, %v2293_v10  ;;  %v2346_v22 = vadd.f32 %v1907_v54, %v2279_v33 }
 0x141   : > { %v1081_v35 = vmul.f32 0.25, %v1045_v41  ;;  %v958_v56 = vsel %vm762_vm5, %v2219_v38, %v1323_v44  ;;  %v1324_v53 = vadd.f32 -1.0, %v1625_v52  ;;  %v858_v46 = vmul.f32 1.442695, %v2305_v23  ;;  %v587_v8 = vpop.f32.mrb[44].mxu0  ;;  %v712_v4 = vpop.f32.mrb[44].mxu1 }
 0x142   : > { %1139 = vst.msk [vmem:[%s2102_s28 + $0xe0] sm:$0xff] %vm1110_vm0, %v1102_v2  ;;  %v2326_v37 = vadd.f32 %v958_v56, %v957_v21  ;;  %v1067_v15 = vadd.f32 %v1031_v13, %v958_v56  ;;  %v934_v17 = vsel %vm738_vm6, %v2222_v42, %v1299_v45  ;;  %1630 = vpow2.f32 %v808_v43  ;;  %v1457_v5 = vpop.f32.mrb[45].mxu0  ;;  %v1532_v6 = vpop.f32.mrb[45].mxu1 }
 0x143   : > { %1118 = vst.msk [vmem:[%s2102_s28 + $0x38] sm:$0xff] %vm1110_vm0, %v1081_v35  ;;  %v2333_v38 = vadd.f32 %v934_v17, %v933_v18  ;;  %v1011_v9 = vadd.f32 %v2167_v7, %v934_v17  ;;  %v1046_v3 = vadd.f32 %v1010_v24, %v934_v17  ;;  %v959_v55 = vsel %vm763_vm7, %v2225_v49, %v1324_v53 }
 0x144   : > { %v1103_v19 = vmul.f32 0.25, %v1067_v15  ;;  %v1032_v20 = vadd.f32 %v2261_v62, %v959_v55  ;;  %1632 = vpow2.f32 %v858_v46  ;;  %v2342_v42 = vadd.f32 %v2246_v57, %v2212_v26 }
 0x145   : > { %v1082_v50 = vmul.f32 0.25, %v1046_v3  ;;  %v2350_v7 = vadd.f32 %v1907_v54, %v2281_v1  ;;  %v2354_v49 = vadd.f32 %v2288_v14, %v2246_v57  ;;  %v592_v62 = vpop.f32.mrb[46].mxu0  ;;  %v717_v39 = vpop.f32.mrb[46].mxu1  ;;  %v2359_v26 = vadd.f32 %v1907_v54, %v582_v27 }
 0x146   : > { %v1627_v0 = vpop.eup %1626  ;;  %1140 = vst.msk [vmem:[%s2102_s28 + $0xe8] sm:$0xff] %vm1110_vm0, %v1103_v19  ;;  %v2362_v18 = vadd.f32 %v932_v12, %v2255_v25  ;;  %v2365_v33 = vadd.f32 %v1907_v54, %v707_v28  ;;  %v2368_v1 = vadd.f32 %v957_v21, %v2288_v14  ;;  %v1460_v13 = vpop.f32.mrb[47].mxu0  ;;  %v810_v30 = vmul.f32 1.442695, %v2346_v22 }
 0x147   : > { %v1535_v57 = vpop.f32.mrb[47].mxu1  ;;  %v1629_v40 = vpop.eup %1628  ;;  %1119 = vst.msk [vmem:[%s2102_s28 + $0x40] sm:$0xff] %vm1110_vm0, %v1082_v50  ;;  %v1300_v16 = vadd.f32 -1.0, %v1627_v0  ;;  %v860_v25 = vmul.f32 1.442695, %v2350_v7  ;;  %vm764_vm9 = vcmp.gt.f32.partialorder %v2267_v59, 0.0  ;;  %v2388_v53 = vadd.f32 %v1907_v54, %v712_v4 }
 0x148   : > { %v1325_v27 = vadd.f32 -1.0, %v1629_v40  ;;  %v812_v12 = vmul.f32 1.442695, %v2359_v26  ;;  %1634 = vpow2.f32 %v810_v30  ;;  %v862_v14 = vmul.f32 1.442695, %v2365_v33 }
 0x149   : > { %v935_v28 = vsel %vm739_vm8, %v2264_v47, %v1300_v16  ;;  %v597_v21 = vpop.f32.mrb[48].mxu0  ;;  %1636 = vpow2.f32 %v860_v25  ;;  %v2385_v47 = vadd.f32 %v1907_v54, %v587_v8  ;;  %vm740_vm10 = vcmp.gt.f32.partialorder %v2293_v10, 0.0 }
 0x14a   : > { %v2379_v24 = vadd.f32 %v935_v28, %v934_v17  ;;  %v1012_v41 = vadd.f32 %v2207_v58, %v935_v28  ;;  %v1047_v44 = vadd.f32 %v1011_v9, %v935_v28  ;;  %v960_v52 = vsel %vm764_vm9, %v2267_v59, %v1325_v27  ;;  %v1463_v2 = vpop.f32.mrb[49].mxu0 }
 0x14b   : > { %v1033_v45 = vadd.f32 %v2271_v60, %v960_v52  ;;  %v1068_v43 = vadd.f32 %v1032_v20, %v960_v52  ;;  %1638 = vpow2.f32 %v812_v12  ;;  %v2391_v58 = vadd.f32 %v1907_v54, %v592_v62 }
 0x14c   : > { %v1631_v35 = vpop.eup %1630  ;;  %v1083_v56 = vmul.f32 0.25, %v1047_v44  ;;  %1640 = vpow2.f32 %v862_v14  ;;  %vm765_vm11 = vcmp.gt.f32.partialorder %v2305_v23, 0.0  ;;  %v814_v60 = vmul.f32 1.442695, %v2385_v47 }
 0x14d   : > { %v1104_v46 = vmul.f32 0.25, %v1068_v43  ;;  %v1301_v59 = vadd.f32 -1.0, %v1631_v35  ;;  %v864_v8 = vmul.f32 1.442695, %v2388_v53  ;;  %v816_v5 = vmul.f32 1.442695, %v2391_v58 }
 0x14e   : > { %v1633_v15 = vpop.eup %1632  ;;  %1120 = vst.msk [vmem:[%s2102_s28 + $0x48] sm:$0xff] %vm1110_vm0, %v1083_v56  ;;  %v2404_v6 = vadd.f32 %v1907_v54, %v717_v39  ;;  %1642 = vpow2.f32 %v814_v60  ;;  %v1652_v39 = vld [vmem:[%s1904_s24] ss:$0 sm:$0xff]  ;;  %vm741_vm12 = vcmp.gt.f32.partialorder %v2346_v22, 0.0  ;;  %vm766_vm13 = vcmp.gt.f32.partialorder %v2350_v7, 0.0 }
 0x14f   : > { %1141 = vst.msk [vmem:[%s2102_s28 + $0xf0] sm:$0xff] %vm1110_vm0, %v1104_v46  ;;  %v936_v4 = vsel %vm740_vm10, %v2293_v10, %v1301_v59  ;;  %v1326_v17 = vadd.f32 -1.0, %v1633_v15  ;;  %1644 = vpow2.f32 %v864_v8  ;;  %v2412_v13 = vadd.f32 %v1652_v39, %v597_v21 }
 0x150   : > { %v982_v9 = vadd.f32 %v936_v4, %v935_v28  ;;  %v1048_v3 = vadd.f32 %v1012_v41, %v936_v4  ;;  %v1013_v55 = vadd.f32 %v2241_v29, %v936_v4  ;;  %v866_v20 = vmul.f32 1.442695, %v2404_v6 }
 0x151   : > { %v961_v19 = vsel %vm765_vm11, %v2305_v23, %v1326_v17  ;;  %1646 = vpow2.f32 %v816_v5  ;;  %vm742_vm14 = vcmp.gt.f32.partialorder %v2359_v26, 0.0  ;;  %vm767_vm15 = vcmp.gt.f32.partialorder %v2365_v33, 0.0 }
 0x152   : > { %v1018_v10 = vadd.f32 %v982_v9, %v2066_v31  ;;  %v1084_v50 = vmul.f32 0.25, %v1048_v3  ;;  %v1034_v62 = vadd.f32 %v2342_v42, %v961_v19  ;;  %v1069_v0 = vadd.f32 %v1033_v45, %v961_v19  ;;  %v1635_v54 = vpop.eup %1634 }
 0x153   : > { %v1302_v57 = vadd.f32 -1.0, %v1635_v54  ;;  %1648 = vpow2.f32 %v866_v20  ;;  %v1637_v40 = vpop.eup %1636  ;;  %v818_v42 = vmul.f32 1.442695, %v2412_v13  ;;  %vm743_vm1 = vcmp.gt.f32.partialorder %v2385_v47, 0.0 }
 0x154   : > { %v1054_v29 = vadd.f32 %v1018_v10, %v1964_v61  ;;  %1121 = vst.msk [vmem:[%s2102_s28 + $0x50] sm:$0xff] %vm1110_vm0, %v1084_v50  ;;  %v1105_v23 = vmul.f32 0.25, %v1069_v0  ;;  %v1327_v25 = vadd.f32 -1.0, %v1637_v40  ;;  %vm768_vm2 = vcmp.gt.f32.partialorder %v2388_v53, 0.0 }
 0x155   : > { %v1639_v16 = vpop.eup %1638  ;;  %v937_v27 = vsel %vm741_vm12, %v2346_v22, %v1302_v57  ;;  %1650 = vpow2.f32 %v818_v42  ;;  %vm744_vm3 = vcmp.gt.f32.partialorder %v2391_v58, 0.0  ;;  %vm769_vm4 = vcmp.gt.f32.partialorder %v2404_v6, 0.0 }
 0x156   : > { %v1090_v30 = vmul.f32 0.25, %v1054_v29  ;;  %1142 = vst.msk [vmem:[%s2102_s28 + $0xf8] sm:$0xff] %vm1110_vm0, %v1105_v23  ;;  %v1641_v12 = vpop.eup %1640  ;;  %v983_v28 = vadd.f32 %v937_v27, %v936_v4  ;;  %v1049_v14 = vadd.f32 %v1013_v55, %v937_v27  ;;  %v1303_v21 = vadd.f32 -1.0, %v1639_v16 }
 0x157   : > { %v962_v41 = vsel %vm766_vm13, %v2350_v7, %v1327_v25  ;;  %v1328_v44 = vadd.f32 -1.0, %v1641_v12  ;;  %vm745_vm5 = vcmp.gt.f32.partialorder %v2412_v13, 0.0 }
 0x158   : > { %1127 = vst.msk [vmem:[%s2102_s28 + $0x80] sm:$0xff] %vm1110_vm0, %v1090_v30  ;;  %v1019_v22 = vadd.f32 %v983_v28, %v1964_v61  ;;  %v1085_v52 = vmul.f32 0.25, %v1049_v14  ;;  %v1035_v2 = vadd.f32 %v2354_v49, %v962_v41  ;;  %v1070_v45 = vadd.f32 %v1034_v62, %v962_v41  ;;  %v1643_v43 = vpop.eup %1642 }
 0x159   : > { %v938_v35 = vsel %vm742_vm14, %v2359_v26, %v1303_v21  ;;  %v963_v56 = vsel %vm767_vm15, %v2365_v33, %v1328_v44  ;;  %v1645_v46 = vpop.eup %1644  ;;  %v1304_v49 = vadd.f32 -1.0, %v1643_v43 }
 0x15a   : > { %v1055_v7 = vadd.f32 %v1019_v22, %v1969_v63  ;;  %1122 = vst.msk [vmem:[%s2102_s28 + $0x58] sm:$0xff] %vm1110_vm0, %v1085_v52  ;;  %v1106_v59 = vmul.f32 0.25, %v1070_v45  ;;  %v1014_v15 = vadd.f32 %v2362_v18, %v938_v35  ;;  %v1036_v61 = vadd.f32 %v2368_v1, %v963_v56 }
 0x15b   : > { %v1071_v60 = vadd.f32 %v1035_v2, %v963_v56  ;;  %v1329_v8 = vadd.f32 -1.0, %v1645_v46  ;;  %v1647_v4 = vpop.eup %1646  ;;  %v939_v18 = vsel %vm743_vm1, %v2385_v47, %v1304_v49 }
 0x15c   : > { %v1091_v17 = vmul.f32 0.25, %v1055_v7  ;;  %1143 = vst.msk [vmem:[%s2102_s28 + $0x100] sm:$0xff] %vm1110_vm0, %v1106_v59  ;;  %v1305_v1 = vadd.f32 -1.0, %v1647_v4  ;;  %v984_v5 = vadd.f32 %v939_v18, %v938_v35  ;;  %v1015_v9 = vadd.f32 %v2313_v48, %v939_v18 }
 0x15d   : > { %v1649_v63 = vpop.eup %1648  ;;  %v1107_v26 = vmul.f32 0.25, %v1071_v60  ;;  %v964_v33 = vsel %vm768_vm2, %v2388_v53, %v1329_v8  ;;  %v1050_v3 = vadd.f32 %v1014_v15, %v939_v18 }
 0x15e   : > { %1128 = vst.msk [vmem:[%s2102_s28 + $0x88] sm:$0xff] %vm1110_vm0, %v1091_v17  ;;  %v1037_v55 = vadd.f32 %v2326_v37, %v964_v33  ;;  %v1072_v19 = vadd.f32 %v1036_v61, %v964_v33  ;;  %v940_v20 = vsel %vm744_vm3, %v2391_v58, %v1305_v1  ;;  %v1330_v47 = vadd.f32 -1.0, %v1649_v63 }
 0x15f   : > { %1144 = vst.msk [vmem:[%s2102_s28 + $0x108] sm:$0xff] %vm1110_vm0, %v1107_v26  ;;  %v1651_v53 = vpop.eup %1650  ;;  %v1020_v10 = vadd.f32 %v984_v5, %v2000_v32  ;;  %v1086_v50 = vmul.f32 0.25, %v1050_v3  ;;  %v985_v62 = vadd.f32 %v940_v20, %v939_v18  ;;  %v1016_v48 = vadd.f32 %v2333_v38, %v940_v20 }
 0x160   : > { %v1108_v0 = vmul.f32 0.25, %v1072_v19  ;;  %v1051_v37 = vadd.f32 %v1015_v9, %v940_v20  ;;  %v965_v54 = vsel %vm769_vm4, %v2404_v6, %v1330_v47  ;;  %v1306_v39 = vadd.f32 -1.0, %v1651_v53 }
 0x161   : > { %v1056_v29 = vadd.f32 %v1020_v10, %v2005_v34  ;;  %1123 = vst.msk [vmem:[%s2102_s28 + $0x60] sm:$0xff] %vm1110_vm0, %v1086_v50  ;;  %v1021_v58 = vadd.f32 %v985_v62, %v2005_v34  ;;  %v1073_v23 = vadd.f32 %v1037_v55, %v965_v54 }
 0x162   : > { %1145 = vst.msk [vmem:[%s2102_s28 + $0x110] sm:$0xff] %vm1110_vm0, %v1108_v0  ;;  %v1087_v32 = vmul.f32 0.25, %v1051_v37  ;;  %v941_v38 = vsel %vm745_vm5, %v2412_v13, %v1306_v39 }
 0x163   : > { %v1092_v57 = vmul.f32 0.25, %v1056_v29  ;;  %v1057_v6 = vadd.f32 %v1021_v58, %v2025_v51  ;;  %v1109_v40 = vmul.f32 0.25, %v1073_v23  ;;  %v986_v42 = vadd.f32 %v941_v38, %v940_v20 }
 0x164   : > { %1124 = vst.msk [vmem:[%s2102_s28 + $0x68] sm:$0xff] %vm1110_vm0, %v1087_v32  ;;  %v987_v34 = vadd.f32 %v2066_v31, %v941_v38  ;;  %v1017_v16 = vadd.f32 %v2379_v24, %v941_v38  ;;  %v1052_v30 = vadd.f32 %v1016_v48, %v941_v38 }
 0x165   : > { %1129 = vst.msk [vmem:[%s2102_s28 + $0x90] sm:$0xff] %vm1110_vm0, %v1092_v57  ;;  %v1093_v13 = vmul.f32 0.25, %v1057_v6  ;;  %1146 = vst.msk [vmem:[%s2102_s28 + $0x118] sm:$0xff] %vm1110_vm0, %v1109_v40  ;;  %v1022_v27 = vadd.f32 %v986_v42, %v2025_v51 }
 0x166   : > { %v1023_v25 = vadd.f32 %v987_v34, %v2045_v11  ;;  %v1053_v12 = vadd.f32 %v1017_v16, %v2066_v31  ;;  %v1088_v28 = vmul.f32 0.25, %v1052_v30 }
 0x167   : > { %1130 = vst.msk [vmem:[%s2102_s28 + $0x98] sm:$0xff] %vm1110_vm0, %v1093_v13  ;;  %v1058_v24 = vadd.f32 %v1022_v27, %v2045_v11 }
 0x168   : > { %v1059_v14 = vadd.f32 %v1023_v25, %v2071_v36  ;;  %v1089_v21 = vmul.f32 0.25, %v1053_v12  ;;  %1125 = vst.msk [vmem:[%s2102_s28 + $0x70] sm:$0xff] %vm1110_vm0, %v1088_v28 }
 0x169   : > { %v1094_v41 = vmul.f32 0.25, %v1058_v24 }
 0x16a   : > { %v1095_v44 = vmul.f32 0.25, %v1059_v14  ;;  %1126 = vst.msk [vmem:[%s2102_s28 + $0x78] sm:$0xff] %vm1110_vm0, %v1089_v21 }
 0x16b   : > { %1131 = vst.msk [vmem:[%s2102_s28 + $0xa0] sm:$0xff] %vm1110_vm0, %v1094_v41 }
 0x16c   : > { %1132 = vst.msk [vmem:[%s2102_s28 + $0xa8] sm:$0xff] %vm1110_vm0, %v1095_v44 }
 0x16d PF: > { %s13_s12 = sadd.s32 1, %s1659_s12  }
 0x16e   : > { %p10_p4 = scmp.ge.s32.totalorder %s13_s12, 5  }
 0x170   :  { %12 = sbr.rel (!%p10_p4) target bundleno = 1 (0x1), region = 68 }

</bundles_post_ra>
